<compile_context>
chip_gen: v6e
topology: v6e:2x2x1
jax: 0.10.0
libtpu: 0.0.40
codegen_flags: <defaults>
</compile_context>

<pallas_src>
import jax
import jax.numpy as jnp
from jax.experimental import pallas as pl
from jax.experimental.pallas import tpu as pltpu

_LANE_CANDIDATES = (16384, 8192, 4096, 2048, 1024, 512, 256, 128)


def _block_bytes_for_device() -> int:
    """Generation-dependent target block size (per the perf review)."""
    try:
        kind = jax.devices()[0].device_kind.lower()
    except Exception:
        kind = ""
    if "v7" in kind:
        return 6 * 1024 * 1024   # v7x: 3.2 TB/s HBM, 64 MiB VMEM -> bigger blocks
    if "v6" in kind:
        return 4 * 1024 * 1024   # v6e: 32 MiB scoped default, plenty of headroom
    return 2 * 1024 * 1024       # v5e / unknown: stay inside 16 MiB scoped default


def _identity_kernel(x_ref, o_ref):
    # Pure pass-through: copy one lane-dense block.
    o_ref[...] = x_ref[...]


def identity_pallas(x, *, materialize: bool = False):
    """Identity forward.

    Default path returns `x` directly (zero data movement — the optimal
    implementation of Identity on every TPU generation).  With
    `materialize=True`, a lane-dense Pallas copy kernel produces a freshly
    materialized output buffer instead.
    """
    if not materialize:
        return x

    if x.ndim == 0 or x.size == 0:
        return x

    n = x.size
    itemsize = x.dtype.itemsize
    block_bytes = _block_bytes_for_device()

    # Widest lane count (multiple of 128) that exactly divides the element
    # count -> no padding, no trailing slice, lane-dense (unmasked) stores.
    lane = None
    for cand in _LANE_CANDIDATES:
        if n % cand == 0:
            lane = cand
            break
    if lane is None:
        # Ragged size: Identity needs no compute at all.
        return x

    rows = n // lane

    # Sublane packing multiple per dtype: f32 -> 8, bf16 -> 16, int8/fp8 -> 32.
    sub = 8 * max(1, 4 // max(1, itemsize))

    # Pick a big block (~block_bytes), sublane-packed, exactly dividing `rows`.
    max_block_rows = max(1, block_bytes // (lane * itemsize))
    if rows <= max_block_rows:
        # Whole array fits in one block (block_shape == array dims is legal).
        block_rows = rows
    else:
        block_rows = None
        r = (max_block_rows // sub) * sub
        while r >= sub:
            if rows % r == 0:
                block_rows = r
                break
            r -= sub
        if block_rows is None:
            # No aligned divisor found.  Single full-array block only if it
            # stays within the per-generation block budget (the previous 8 MiB
            # fallback could blow v5e's 16 MiB scoped VMEM once double-buffered
            # in+out is accounted for); otherwise skip the copy entirely.
            if rows * lane * itemsize <= block_bytes:
                block_rows = rows
            else:
                return x

    grid = (rows // block_rows,)
    x2 = x.reshape(rows, lane)

    # 2 arrays x 2 pipeline buffers x block_bytes, plus a little headroom.
    vmem_limit = 4 * block_rows * lane * itemsize + 2 * 1024 * 1024

    out2 = pl.pallas_call(
        _identity_kernel,
        out_shape=jax.ShapeDtypeStruct((rows, lane), x.dtype),
        grid=grid,
        in_specs=[pl.BlockSpec((block_rows, lane), lambda i: (i, 0))],
        out_specs=pl.BlockSpec((block_rows, lane), lambda i: (i, 0)),
        compiler_params=pltpu.CompilerParams(
            dimension_semantics=("parallel",),
            vmem_limit_bytes=vmem_limit,
        ),
    )(x2)

    return out2.reshape(x.shape)


class Identity:
    """JAX/Pallas equivalent of torch Identity: __call__(x, *args, **kwargs) = x."""

    def __init__(self):
        pass

    def __call__(self, x, *args, **kwargs):
        # Extra args/kwargs are accepted and ignored, matching the torch module.
        # Zero-cost pass-through (the perf-optimal Identity on every TPU gen).
        return identity_pallas(x)


if __name__ == "__main__":
    key = jax.random.PRNGKey(0)

    N, C, H, W = 2, 4, 16, 16
    x = jax.random.normal(key, (N, C, H, W), jnp.float32)

    identity = Identity()

    # Default (optimal) path: pure pass-through, no kernel launch.
    out = identity(x, "ignored_positional", unused_kw=123)
    out = jax.block_until_ready(out)
    assert out.shape == x.shape and out.dtype == x.dtype
    assert bool(jnp.array_equal(out, x))

    # Exercise the Pallas copy kernel once (materialized-buffer path).
    out_copy = identity_pallas(x, materialize=True)
    out_copy = jax.block_until_ready(out_copy)
    assert out_copy.shape == x.shape and out_copy.dtype == x.dtype
    assert bool(jnp.array_equal(out_copy, x))

    print("KERNEL_OK")
</pallas_src>

<mosaic_0001>
module attributes {stable_mosaic.version = 11 : i64} {
  func.func @_identity_kernel(%arg0: i32, %arg1: memref<1x2048xf32, #tpu.memory_space<vmem>>, %arg2: memref<1x2048xf32, #tpu.memory_space<vmem>>) attributes {dimension_semantics = [#tpu.dimension_semantics<parallel>], iteration_bounds = array<i64: 1>, scalar_prefetch = 0 : i64, scratch_operands = 0 : i64, tpu.core_type = #tpu.core_type<tc>, window_params = [{transform_indices = @transform_0, window_bounds = array<i64: 1, 2048>}, {transform_indices = @transform_1, window_bounds = array<i64: 1, 2048>}]} {
    %c0 = arith.constant 0 : index
    %c0_0 = arith.constant 0 : index
    %0 = vector.load %arg1[%c0, %c0_0] : memref<1x2048xf32, #tpu.memory_space<vmem>>, vector<1x2048xf32>
    %c0_1 = arith.constant 0 : index
    %c0_2 = arith.constant 0 : index
    %1 = vector.load %arg2[%c0_1, %c0_2] : memref<1x2048xf32, #tpu.memory_space<vmem>>, vector<1x2048xf32>
    tpu.vector_store %arg2[%c0_1, %c0_2], %0 {strides = array<i32>} : memref<1x2048xf32, #tpu.memory_space<vmem>>, vector<1x2048xf32>,
    return
  }
  func.func @transform_0(%arg0: i32) -> (i32, i32) {
    %c0_i32 = arith.constant 0 : i32
    %c0_i32_0 = arith.constant 0 : i32
    return %arg0, %c0_i32 : i32, i32
  }
  func.func @transform_1(%arg0: i32) -> (i32, i32) {
    %c0_i32 = arith.constant 0 : i32
    %c0_i32_0 = arith.constant 0 : i32
    return %arg0, %c0_i32 : i32, i32
  }
}

</mosaic_0001>

<bundles_post_ra>
// kernel: tpu_custom_call.1
= control target key start
LH: loop header
LB: loop body
LE: loop exit
PB: predicated region body
PF: predicated region fallthrough
CT: control target
= control target key end

     0   :  { %6 = vsyncpa [#allocation3], 0  ;;  %s104_s0 = inlined_call_operand.hbm [shape: f32[1,2048], index: 0, kind: input, shape index: {}]   ;;  %s105_s1 = inlined_call_operand.hbm [shape: f32[1,2048], index: 1, kind: output, shape index: {}]  }
   0x1   :  { %7 = vsyncpa [#allocation4], 0  ;;  %s86_s6 = smov [#allocation2]  }
   0x2   :  { %s14_s7 = sshll.u32 %s86_s6, 4  ;;  %s15_s7 = int_to_ptr.vmem [resolvable:$true] %s14_s7 }
   0x3   :  { %s50_s8 = scalar_lea.vmem %s15_s7, 256  ;;  %p55_p1 = scmp.lt.s32.totalorder %s15_s7, %s15_s7 }
   0x4   :  { %p51_p0 = scmp.ne.s32.totalorder %s15_s7, %s50_s8  ;;  %p56_p2 = scmp.lt.s32.totalorder %s50_s8, %s50_s8 }
   0x6   :  { %p57_p3 = por %p56_p2, %p55_p1 }
   0x8   :  { %p58_p4 = pnand %p57_p3, %p51_p0 }
   0xa   :  { %61 = shalt.err (!%p58_p4)
}
   0xb   :  { %17 = dma.hbm_to_vmem [thread:$0]  %s104_s0, 256, %s15_s7, [#allocation3]  }
   0xc   :  { %82 = dma.done.wait [#allocation3], 256  }
   0xd   :  { %83 = vsyncadd [#allocation3], 4294967040  ;;  %s87_s11 = smov [#allocation5]   ;;  %v21_v0 = vld [vmem:[#allocation2] sm:$0xff]  ;;  %v22_v1 = vld [vmem:[#allocation2 + $0x8] sm:$0xff] }
   0xe   :  { %s31_s12 = sshll.u32 %s87_s11, 4  ;;  %23 = vst [vmem:[#allocation5] sm:$0xff] %v21_v0  ;;  %24 = vst [vmem:[#allocation5 + $0x8] sm:$0xff] %v22_v1  ;;  %s32_s12 = int_to_ptr.vmem [resolvable:$true] %s31_s12 }
   0xf   :  { %s62_s13 = scalar_lea.vmem %s32_s12, 256  ;;  %p67_p6 = scmp.lt.s32.totalorder %s32_s12, %s32_s12 }
  0x10   :  { %p63_p5 = scmp.ne.s32.totalorder %s32_s12, %s62_s13  ;;  %p68_p7 = scmp.lt.s32.totalorder %s62_s13, %s62_s13 }
  0x12   :  { %p69_p8 = por %p68_p7, %p67_p6 }
  0x14   :  { %p70_p9 = pnand %p69_p8, %p63_p5 }
  0x16   :  { %73 = shalt.err (!%p70_p9)
}
  0x17   :  { %34 = dma.vmem_to_hbm [thread:$0]  %s32_s12, 256, %s105_s1, [#allocation4]  }
  0x18   :  { %84 = dma.done.wait [#allocation4], 256  }
  0x19   :  { %85 = vsyncadd [#allocation4], 4294967040 }
  0x1a   :  { %38 = vsyncpa [#allocation3], 1 }
  0x1b   :  { %39 = vsyncpa [#allocation4], 1 }

</bundles_post_ra>
